<compile_context>
chip_gen: v7x
topology: tpu7x:2x2x1
jax: 0.10.0
libtpu: 0.0.40
codegen_flags: <defaults>
</compile_context>

<pallas_src>
import jax
import jax.numpy as jnp
from jax.experimental import pallas as pl
from jax.experimental.pallas import tpu as pltpu


def _binary_classifier_kernel(xT_ref, w1_ref, b1_ref, w2_ref, b2_ref, o_ref):
    # xT_ref: (4, Bt) VMEM  -- features on sublanes, batch on lanes (lane-dense)
    # w1_ref: (4, 8) SMEM, b1_ref: (8,) SMEM, w2_ref: (8,) SMEM, b2_ref: (1,) SMEM
    xT = xT_ref[...]                                    # (4, Bt) f32
    bt = xT.shape[1]

    # Layer-2 accumulator, shape (1, Bt).
    z = jnp.zeros((1, bt), dtype=jnp.float32)

    # Unrolled VPU broadcast-FMAs: K=4 / K=8 contractions waste the MXU, so
    # keep everything in the vector-ALU slots.
    for j in range(8):                                  # hidden units
        acc = xT[0:1, :] * w1_ref[0, j]
        for k in range(1, 4):                           # input features
            acc = acc + xT[k:k + 1, :] * w1_ref[k, j]
        h_j = jnp.maximum(acc + b1_ref[j], 0.0)         # ReLU, (1, Bt)
        z = z + h_j * w2_ref[j]

    z = z + b2_ref[0]                                   # bias folded once per tile
    o_ref[...] = jax.nn.sigmoid(z).astype(o_ref.dtype)  # EUP exp + reciprocal


def binary_classifier_forward(x, w1, b1, w2, b2, *, block_rows=32768):
    """x: (B, 4) f32; returns (B, 1) f32 probabilities."""
    B = x.shape[0]

    # Batch tile on the lane axis: multiple of 128, at most block_rows.
    bt = max(128, min(block_rows, pl.cdiv(B, 128) * 128))
    bt = (bt // 128) * 128
    b_pad = pl.cdiv(B, bt) * bt

    # Lane-dense transposed input (4, B_pad). Zero-padding rows are computed
    # and sliced off afterwards.
    xT = jnp.transpose(x.astype(jnp.float32))           # (4, B)
    if b_pad != B:
        xT = jnp.pad(xT, ((0, 0), (0, b_pad - B)))

    smem_spec = pl.BlockSpec(memory_space=pltpu.MemorySpace.SMEM)

    out = pl.pallas_call(
        _binary_classifier_kernel,
        out_shape=jax.ShapeDtypeStruct((1, b_pad), jnp.float32),
        grid=(b_pad // bt,),
        in_specs=[
            # (4, bt): first dim equals the full dim (exempt from 8-rule),
            # lane dim is a multiple of 128.
            pl.BlockSpec((4, bt), lambda i: (0, i)),
            smem_spec,  # w1 (4, 8)
            smem_spec,  # b1 (8,)
            smem_spec,  # w2 (8,)
            smem_spec,  # b2 (1,)
        ],
        out_specs=pl.BlockSpec((1, bt), lambda i: (0, i)),
        compiler_params=pltpu.CompilerParams(
            dimension_semantics=("parallel",)),
        cost_estimate=pl.CostEstimate(
            flops=90 * b_pad, transcendentals=b_pad, bytes_accessed=20 * b_pad),
    )(xT, w1, b1, w2, b2)

    # (1, B_pad) -> (B, 1): slice off padding; reshape is contiguous/free.
    return out[0, :B].reshape(B, 1)


def init_params(key):
    """Deterministic synthetic params matching nn.Linear(4,8), nn.Linear(8,1).

    Stored pre-transposed for right-multiplication: W1 (4,8); W2 kept as (8,)
    and b2 as (1,) so the kernel reads them as SMEM scalars.
    """
    k1, k2, k3, k4 = jax.random.split(key, 4)
    w1 = jax.random.normal(k1, (4, 8), jnp.float32) * 0.5
    b1 = jax.random.normal(k2, (8,), jnp.float32) * 0.1
    w2 = jax.random.normal(k3, (8,), jnp.float32) * 0.5
    b2 = jax.random.normal(k4, (1,), jnp.float32) * 0.1
    return w1, b1, w2, b2


def _reference(x, w1, b1, w2, b2):
    h = jnp.maximum(x @ w1 + b1, 0.0)        # (B, 8)
    z = h @ w2 + b2                          # (B,)
    return jax.nn.sigmoid(z)[:, None]        # (B, 1)


if __name__ == "__main__":
    key = jax.random.PRNGKey(0)
    kx, kp = jax.random.split(key)

    B = 8  # small demo batch
    x = jax.random.normal(kx, (B, 4), jnp.float32)
    w1, b1, w2, b2 = init_params(kp)

    out = binary_classifier_forward(x, w1, b1, w2, b2)
    out = jax.block_until_ready(out)

    ref = _reference(x, w1, b1, w2, b2)
    assert out.shape == (B, 1), out.shape
    assert jnp.allclose(out, ref, atol=1e-5, rtol=1e-5), (out, ref)

    print("KERNEL_OK")
</pallas_src>

<mosaic_0001>
module attributes {stable_mosaic.version = 11 : i64} {
  func.func @_binary_classifier_kernel(%arg0: i32, %arg1: memref<4x128xf32, #tpu.memory_space<vmem>>, %arg2: memref<4x8xf32, #tpu.memory_space<smem>>, %arg3: memref<8xf32, #tpu.memory_space<smem>>, %arg4: memref<8xf32, #tpu.memory_space<smem>>, %arg5: memref<1xf32, #tpu.memory_space<smem>>, %arg6: memref<1x128xf32, #tpu.memory_space<vmem>>) attributes {dimension_semantics = [#tpu.dimension_semantics<parallel>], iteration_bounds = array<i64: 1>, scalar_prefetch = 0 : i64, scratch_operands = 0 : i64, tpu.core_type = #tpu.core_type<tc>, window_params = [{transform_indices = @transform_0, window_bounds = array<i64: 4, 128>}, {transform_indices = @transform_1, window_bounds = array<i64: 4, 8>}, {transform_indices = @transform_2, window_bounds = array<i64: 8>}, {transform_indices = @transform_3, window_bounds = array<i64: 8>}, {transform_indices = @transform_4, window_bounds = array<i64: 1>}, {transform_indices = @transform_5, window_bounds = array<i64: 1, 128>}]} {
    %c0 = arith.constant 0 : index
    %c0_0 = arith.constant 0 : index
    %0 = vector.load %arg1[%c0, %c0_0] : memref<4x128xf32, #tpu.memory_space<vmem>>, vector<4x128xf32>
    %cst = arith.constant 0.000000e+00 : f32
    %1 = vector.broadcast %cst : f32 to vector<1x128xf32>
    %2 = vector.extract_strided_slice %0 {offsets = [0, 0], sizes = [1, 128], strides = [1, 1]} : vector<4x128xf32> to vector<1x128xf32>
    %c0_1 = arith.constant 0 : index
    %c0_2 = arith.constant 0 : index
    %3 = memref.load %arg2[%c0_1, %c0_2] : memref<4x8xf32, #tpu.memory_space<smem>>
    %4 = vector.broadcast %3 : f32 to vector<1x128xf32>
    %5 = arith.mulf %2, %4 : vector<1x128xf32>
    %6 = vector.extract_strided_slice %0 {offsets = [1, 0], sizes = [1, 128], strides = [1, 1]} : vector<4x128xf32> to vector<1x128xf32>
    %c1 = arith.constant 1 : index
    %c0_3 = arith.constant 0 : index
    %7 = memref.load %arg2[%c1, %c0_3] : memref<4x8xf32, #tpu.memory_space<smem>>
    %8 = vector.broadcast %7 : f32 to vector<1x128xf32>
    %9 = arith.mulf %6, %8 : vector<1x128xf32>
    %10 = arith.addf %5, %9 : vector<1x128xf32>
    %11 = vector.extract_strided_slice %0 {offsets = [2, 0], sizes = [1, 128], strides = [1, 1]} : vector<4x128xf32> to vector<1x128xf32>
    %c2 = arith.constant 2 : index
    %c0_4 = arith.constant 0 : index
    %12 = memref.load %arg2[%c2, %c0_4] : memref<4x8xf32, #tpu.memory_space<smem>>
    %13 = vector.broadcast %12 : f32 to vector<1x128xf32>
    %14 = arith.mulf %11, %13 : vector<1x128xf32>
    %15 = arith.addf %10, %14 : vector<1x128xf32>
    %16 = vector.extract_strided_slice %0 {offsets = [3, 0], sizes = [1, 128], strides = [1, 1]} : vector<4x128xf32> to vector<1x128xf32>
    %c3 = arith.constant 3 : index
    %c0_5 = arith.constant 0 : index
    %17 = memref.load %arg2[%c3, %c0_5] : memref<4x8xf32, #tpu.memory_space<smem>>
    %18 = vector.broadcast %17 : f32 to vector<1x128xf32>
    %19 = arith.mulf %16, %18 : vector<1x128xf32>
    %20 = arith.addf %15, %19 : vector<1x128xf32>
    %c0_6 = arith.constant 0 : index
    %21 = memref.load %arg3[%c0_6] : memref<8xf32, #tpu.memory_space<smem>>
    %22 = vector.broadcast %21 : f32 to vector<1x128xf32>
    %23 = arith.addf %20, %22 : vector<1x128xf32>
    %cst_7 = arith.constant 0.000000e+00 : f32
    %24 = vector.broadcast %cst_7 : f32 to vector<1x128xf32>
    %25 = arith.maximumf %23, %24 : vector<1x128xf32>
    %c0_8 = arith.constant 0 : index
    %26 = memref.load %arg4[%c0_8] : memref<8xf32, #tpu.memory_space<smem>>
    %27 = vector.broadcast %26 : f32 to vector<1x128xf32>
    %28 = arith.mulf %25, %27 : vector<1x128xf32>
    %29 = arith.addf %1, %28 : vector<1x128xf32>
    %30 = vector.extract_strided_slice %0 {offsets = [0, 0], sizes = [1, 128], strides = [1, 1]} : vector<4x128xf32> to vector<1x128xf32>
    %c0_9 = arith.constant 0 : index
    %c1_10 = arith.constant 1 : index
    %31 = memref.load %arg2[%c0_9, %c1_10] : memref<4x8xf32, #tpu.memory_space<smem>>
    %32 = vector.broadcast %31 : f32 to vector<1x128xf32>
    %33 = arith.mulf %30, %32 : vector<1x128xf32>
    %34 = vector.extract_strided_slice %0 {offsets = [1, 0], sizes = [1, 128], strides = [1, 1]} : vector<4x128xf32> to vector<1x128xf32>
    %c1_11 = arith.constant 1 : index
    %c1_12 = arith.constant 1 : index
    %35 = memref.load %arg2[%c1_11, %c1_12] : memref<4x8xf32, #tpu.memory_space<smem>>
    %36 = vector.broadcast %35 : f32 to vector<1x128xf32>
    %37 = arith.mulf %34, %36 : vector<1x128xf32>
    %38 = arith.addf %33, %37 : vector<1x128xf32>
    %39 = vector.extract_strided_slice %0 {offsets = [2, 0], sizes = [1, 128], strides = [1, 1]} : vector<4x128xf32> to vector<1x128xf32>
    %c2_13 = arith.constant 2 : index
    %c1_14 = arith.constant 1 : index
    %40 = memref.load %arg2[%c2_13, %c1_14] : memref<4x8xf32, #tpu.memory_space<smem>>
    %41 = vector.broadcast %40 : f32 to vector<1x128xf32>
    %42 = arith.mulf %39, %41 : vector<1x128xf32>
    %43 = arith.addf %38, %42 : vector<1x128xf32>
    %44 = vector.extract_strided_slice %0 {offsets = [3, 0], sizes = [1, 128], strides = [1, 1]} : vector<4x128xf32> to vector<1x128xf32>
    %c3_15 = arith.constant 3 : index
    %c1_16 = arith.constant 1 : index
    %45 = memref.load %arg2[%c3_15, %c1_16] : memref<4x8xf32, #tpu.memory_space<smem>>
    %46 = vector.broadcast %45 : f32 to vector<1x128xf32>
    %47 = arith.mulf %44, %46 : vector<1x128xf32>
    %48 = arith.addf %43, %47 : vector<1x128xf32>
    %c1_17 = arith.constant 1 : index
    %49 = memref.load %arg3[%c1_17] : memref<8xf32, #tpu.memory_space<smem>>
    %50 = vector.broadcast %49 : f32 to vector<1x128xf32>
    %51 = arith.addf %48, %50 : vector<1x128xf32>
    %cst_18 = arith.constant 0.000000e+00 : f32
    %52 = vector.broadcast %cst_18 : f32 to vector<1x128xf32>
    %53 = arith.maximumf %51, %52 : vector<1x128xf32>
    %c1_19 = arith.constant 1 : index
    %54 = memref.load %arg4[%c1_19] : memref<8xf32, #tpu.memory_space<smem>>
    %55 = vector.broadcast %54 : f32 to vector<1x128xf32>
    %56 = arith.mulf %53, %55 : vector<1x128xf32>
    %57 = arith.addf %29, %56 : vector<1x128xf32>
    %58 = vector.extract_strided_slice %0 {offsets = [0, 0], sizes = [1, 128], strides = [1, 1]} : vector<4x128xf32> to vector<1x128xf32>
    %c0_20 = arith.constant 0 : index
    %c2_21 = arith.constant 2 : index
    %59 = memref.load %arg2[%c0_20, %c2_21] : memref<4x8xf32, #tpu.memory_space<smem>>
    %60 = vector.broadcast %59 : f32 to vector<1x128xf32>
    %61 = arith.mulf %58, %60 : vector<1x128xf32>
    %62 = vector.extract_strided_slice %0 {offsets = [1, 0], sizes = [1, 128], strides = [1, 1]} : vector<4x128xf32> to vector<1x128xf32>
    %c1_22 = arith.constant 1 : index
    %c2_23 = arith.constant 2 : index
    %63 = memref.load %arg2[%c1_22, %c2_23] : memref<4x8xf32, #tpu.memory_space<smem>>
    %64 = vector.broadcast %63 : f32 to vector<1x128xf32>
    %65 = arith.mulf %62, %64 : vector<1x128xf32>
    %66 = arith.addf %61, %65 : vector<1x128xf32>
    %67 = vector.extract_strided_slice %0 {offsets = [2, 0], sizes = [1, 128], strides = [1, 1]} : vector<4x128xf32> to vector<1x128xf32>
    %c2_24 = arith.constant 2 : index
    %c2_25 = arith.constant 2 : index
    %68 = memref.load %arg2[%c2_24, %c2_25] : memref<4x8xf32, #tpu.memory_space<smem>>
    %69 = vector.broadcast %68 : f32 to vector<1x128xf32>
    %70 = arith.mulf %67, %69 : vector<1x128xf32>
    %71 = arith.addf %66, %70 : vector<1x128xf32>
    %72 = vector.extract_strided_slice %0 {offsets = [3, 0], sizes = [1, 128], strides = [1, 1]} : vector<4x128xf32> to vector<1x128xf32>
    %c3_26 = arith.constant 3 : index
    %c2_27 = arith.constant 2 : index
    %73 = memref.load %arg2[%c3_26, %c2_27] : memref<4x8xf32, #tpu.memory_space<smem>>
    %74 = vector.broadcast %73 : f32 to vector<1x128xf32>
    %75 = arith.mulf %72, %74 : vector<1x128xf32>
    %76 = arith.addf %71, %75 : vector<1x128xf32>
    %c2_28 = arith.constant 2 : index
    %77 = memref.load %arg3[%c2_28] : memref<8xf32, #tpu.memory_space<smem>>
    %78 = vector.broadcast %77 : f32 to vector<1x128xf32>
    %79 = arith.addf %76, %78 : vector<1x128xf32>
    %cst_29 = arith.constant 0.000000e+00 : f32
    %80 = vector.broadcast %cst_29 : f32 to vector<1x128xf32>
    %81 = arith.maximumf %79, %80 : vector<1x128xf32>
    %c2_30 = arith.constant 2 : index
    %82 = memref.load %arg4[%c2_30] : memref<8xf32, #tpu.memory_space<smem>>
    %83 = vector.broadcast %82 : f32 to vector<1x128xf32>
    %84 = arith.mulf %81, %83 : vector<1x128xf32>
    %85 = arith.addf %57, %84 : vector<1x128xf32>
    %86 = vector.extract_strided_slice %0 {offsets = [0, 0], sizes = [1, 128], strides = [1, 1]} : vector<4x128xf32> to vector<1x128xf32>
    %c0_31 = arith.constant 0 : index
    %c3_32 = arith.constant 3 : index
    %87 = memref.load %arg2[%c0_31, %c3_32] : memref<4x8xf32, #tpu.memory_space<smem>>
    %88 = vector.broadcast %87 : f32 to vector<1x128xf32>
    %89 = arith.mulf %86, %88 : vector<1x128xf32>
    %90 = vector.extract_strided_slice %0 {offsets = [1, 0], sizes = [1, 128], strides = [1, 1]} : vector<4x128xf32> to vector<1x128xf32>
    %c1_33 = arith.constant 1 : index
    %c3_34 = arith.constant 3 : index
    %91 = memref.load %arg2[%c1_33, %c3_34] : memref<4x8xf32, #tpu.memory_space<smem>>
    %92 = vector.broadcast %91 : f32 to vector<1x128xf32>
    %93 = arith.mulf %90, %92 : vector<1x128xf32>
    %94 = arith.addf %89, %93 : vector<1x128xf32>
    %95 = vector.extract_strided_slice %0 {offsets = [2, 0], sizes = [1, 128], strides = [1, 1]} : vector<4x128xf32> to vector<1x128xf32>
    %c2_35 = arith.constant 2 : index
    %c3_36 = arith.constant 3 : index
    %96 = memref.load %arg2[%c2_35, %c3_36] : memref<4x8xf32, #tpu.memory_space<smem>>
    %97 = vector.broadcast %96 : f32 to vector<1x128xf32>
    %98 = arith.mulf %95, %97 : vector<1x128xf32>
    %99 = arith.addf %94, %98 : vector<1x128xf32>
    %100 = vector.extract_strided_slice %0 {offsets = [3, 0], sizes = [1, 128], strides = [1, 1]} : vector<4x128xf32> to vector<1x128xf32>
    %c3_37 = arith.constant 3 : index
    %c3_38 = arith.constant 3 : index
    %101 = memref.load %arg2[%c3_37, %c3_38] : memref<4x8xf32, #tpu.memory_space<smem>>
    %102 = vector.broadcast %101 : f32 to vector<1x128xf32>
    %103 = arith.mulf %100, %102 : vector<1x128xf32>
    %104 = arith.addf %99, %103 : vector<1x128xf32>
    %c3_39 = arith.constant 3 : index
    %105 = memref.load %arg3[%c3_39] : memref<8xf32, #tpu.memory_space<smem>>
    %106 = vector.broadcast %105 : f32 to vector<1x128xf32>
    %107 = arith.addf %104, %106 : vector<1x128xf32>
    %cst_40 = arith.constant 0.000000e+00 : f32
    %108 = vector.broadcast %cst_40 : f32 to vector<1x128xf32>
    %109 = arith.maximumf %107, %108 : vector<1x128xf32>
    %c3_41 = arith.constant 3 : index
    %110 = memref.load %arg4[%c3_41] : memref<8xf32, #tpu.memory_space<smem>>
    %111 = vector.broadcast %110 : f32 to vector<1x128xf32>
    %112 = arith.mulf %109, %111 : vector<1x128xf32>
    %113 = arith.addf %85, %112 : vector<1x128xf32>
    %114 = vector.extract_strided_slice %0 {offsets = [0, 0], sizes = [1, 128], strides = [1, 1]} : vector<4x128xf32> to vector<1x128xf32>
    %c0_42 = arith.constant 0 : index
    %c4 = arith.constant 4 : index
    %115 = memref.load %arg2[%c0_42, %c4] : memref<4x8xf32, #tpu.memory_space<smem>>
    %116 = vector.broadcast %115 : f32 to vector<1x128xf32>
    %117 = arith.mulf %114, %116 : vector<1x128xf32>
    %118 = vector.extract_strided_slice %0 {offsets = [1, 0], sizes = [1, 128], strides = [1, 1]} : vector<4x128xf32> to vector<1x128xf32>
    %c1_43 = arith.constant 1 : index
    %c4_44 = arith.constant 4 : index
    %119 = memref.load %arg2[%c1_43, %c4_44] : memref<4x8xf32, #tpu.memory_space<smem>>
    %120 = vector.broadcast %119 : f32 to vector<1x128xf32>
    %121 = arith.mulf %118, %120 : vector<1x128xf32>
    %122 = arith.addf %117, %121 : vector<1x128xf32>
    %123 = vector.extract_strided_slice %0 {offsets = [2, 0], sizes = [1, 128], strides = [1, 1]} : vector<4x128xf32> to vector<1x128xf32>
    %c2_45 = arith.constant 2 : index
    %c4_46 = arith.constant 4 : index
    %124 = memref.load %arg2[%c2_45, %c4_46] : memref<4x8xf32, #tpu.memory_space<smem>>
    %125 = vector.broadcast %124 : f32 to vector<1x128xf32>
    %126 = arith.mulf %123, %125 : vector<1x128xf32>
    %127 = arith.addf %122, %126 : vector<1x128xf32>
    %128 = vector.extract_strided_slice %0 {offsets = [3, 0], sizes = [1, 128], strides = [1, 1]} : vector<4x128xf32> to vector<1x128xf32>
    %c3_47 = arith.constant 3 : index
    %c4_48 = arith.constant 4 : index
    %129 = memref.load %arg2[%c3_47, %c4_48] : memref<4x8xf32, #tpu.memory_space<smem>>
    %130 = vector.broadcast %129 : f32 to vector<1x128xf32>
    %131 = arith.mulf %128, %130 : vector<1x128xf32>
    %132 = arith.addf %127, %131 : vector<1x128xf32>
    %c4_49 = arith.constant 4 : index
    %133 = memref.load %arg3[%c4_49] : memref<8xf32, #tpu.memory_space<smem>>
    %134 = vector.broadcast %133 : f32 to vector<1x128xf32>
    %135 = arith.addf %132, %134 : vector<1x128xf32>
    %cst_50 = arith.constant 0.000000e+00 : f32
    %136 = vector.broadcast %cst_50 : f32 to vector<1x128xf32>
    %137 = arith.maximumf %135, %136 : vector<1x128xf32>
    %c4_51 = arith.constant 4 : index
    %138 = memref.load %arg4[%c4_51] : memref<8xf32, #tpu.memory_space<smem>>
    %139 = vector.broadcast %138 : f32 to vector<1x128xf32>
    %140 = arith.mulf %137, %139 : vector<1x128xf32>
    %141 = arith.addf %113, %140 : vector<1x128xf32>
    %142 = vector.extract_strided_slice %0 {offsets = [0, 0], sizes = [1, 128], strides = [1, 1]} : vector<4x128xf32> to vector<1x128xf32>
    %c0_52 = arith.constant 0 : index
    %c5 = arith.constant 5 : index
    %143 = memref.load %arg2[%c0_52, %c5] : memref<4x8xf32, #tpu.memory_space<smem>>
    %144 = vector.broadcast %143 : f32 to vector<1x128xf32>
    %145 = arith.mulf %142, %144 : vector<1x128xf32>
    %146 = vector.extract_strided_slice %0 {offsets = [1, 0], sizes = [1, 128], strides = [1, 1]} : vector<4x128xf32> to vector<1x128xf32>
    %c1_53 = arith.constant 1 : index
    %c5_54 = arith.constant 5 : index
    %147 = memref.load %arg2[%c1_53, %c5_54] : memref<4x8xf32, #tpu.memory_space<smem>>
    %148 = vector.broadcast %147 : f32 to vector<1x128xf32>
    %149 = arith.mulf %146, %148 : vector<1x128xf32>
    %150 = arith.addf %145, %149 : vector<1x128xf32>
    %151 = vector.extract_strided_slice %0 {offsets = [2, 0], sizes = [1, 128], strides = [1, 1]} : vector<4x128xf32> to vector<1x128xf32>
    %c2_55 = arith.constant 2 : index
    %c5_56 = arith.constant 5 : index
    %152 = memref.load %arg2[%c2_55, %c5_56] : memref<4x8xf32, #tpu.memory_space<smem>>
    %153 = vector.broadcast %152 : f32 to vector<1x128xf32>
    %154 = arith.mulf %151, %153 : vector<1x128xf32>
    %155 = arith.addf %150, %154 : vector<1x128xf32>
    %156 = vector.extract_strided_slice %0 {offsets = [3, 0], sizes = [1, 128], strides = [1, 1]} : vector<4x128xf32> to vector<1x128xf32>
    %c3_57 = arith.constant 3 : index
    %c5_58 = arith.constant 5 : index
    %157 = memref.load %arg2[%c3_57, %c5_58] : memref<4x8xf32, #tpu.memory_space<smem>>
    %158 = vector.broadcast %157 : f32 to vector<1x128xf32>
    %159 = arith.mulf %156, %158 : vector<1x128xf32>
    %160 = arith.addf %155, %159 : vector<1x128xf32>
    %c5_59 = arith.constant 5 : index
    %161 = memref.load %arg3[%c5_59] : memref<8xf32, #tpu.memory_space<smem>>
    %162 = vector.broadcast %161 : f32 to vector<1x128xf32>
    %163 = arith.addf %160, %162 : vector<1x128xf32>
    %cst_60 = arith.constant 0.000000e+00 : f32
    %164 = vector.broadcast %cst_60 : f32 to vector<1x128xf32>
    %165 = arith.maximumf %163, %164 : vector<1x128xf32>
    %c5_61 = arith.constant 5 : index
    %166 = memref.load %arg4[%c5_61] : memref<8xf32, #tpu.memory_space<smem>>
    %167 = vector.broadcast %166 : f32 to vector<1x128xf32>
    %168 = arith.mulf %165, %167 : vector<1x128xf32>
    %169 = arith.addf %141, %168 : vector<1x128xf32>
    %170 = vector.extract_strided_slice %0 {offsets = [0, 0], sizes = [1, 128], strides = [1, 1]} : vector<4x128xf32> to vector<1x128xf32>
    %c0_62 = arith.constant 0 : index
    %c6 = arith.constant 6 : index
    %171 = memref.load %arg2[%c0_62, %c6] : memref<4x8xf32, #tpu.memory_space<smem>>
    %172 = vector.broadcast %171 : f32 to vector<1x128xf32>
    %173 = arith.mulf %170, %172 : vector<1x128xf32>
    %174 = vector.extract_strided_slice %0 {offsets = [1, 0], sizes = [1, 128], strides = [1, 1]} : vector<4x128xf32> to vector<1x128xf32>
    %c1_63 = arith.constant 1 : index
    %c6_64 = arith.constant 6 : index
    %175 = memref.load %arg2[%c1_63, %c6_64] : memref<4x8xf32, #tpu.memory_space<smem>>
    %176 = vector.broadcast %175 : f32 to vector<1x128xf32>
    %177 = arith.mulf %174, %176 : vector<1x128xf32>
    %178 = arith.addf %173, %177 : vector<1x128xf32>
    %179 = vector.extract_strided_slice %0 {offsets = [2, 0], sizes = [1, 128], strides = [1, 1]} : vector<4x128xf32> to vector<1x128xf32>
    %c2_65 = arith.constant 2 : index
    %c6_66 = arith.constant 6 : index
    %180 = memref.load %arg2[%c2_65, %c6_66] : memref<4x8xf32, #tpu.memory_space<smem>>
    %181 = vector.broadcast %180 : f32 to vector<1x128xf32>
    %182 = arith.mulf %179, %181 : vector<1x128xf32>
    %183 = arith.addf %178, %182 : vector<1x128xf32>
    %184 = vector.extract_strided_slice %0 {offsets = [3, 0], sizes = [1, 128], strides = [1, 1]} : vector<4x128xf32> to vector<1x128xf32>
    %c3_67 = arith.constant 3 : index
    %c6_68 = arith.constant 6 : index
    %185 = memref.load %arg2[%c3_67, %c6_68] : memref<4x8xf32, #tpu.memory_space<smem>>
    %186 = vector.broadcast %185 : f32 to vector<1x128xf32>
    %187 = arith.mulf %184, %186 : vector<1x128xf32>
    %188 = arith.addf %183, %187 : vector<1x128xf32>
    %c6_69 = arith.constant 6 : index
    %189 = memref.load %arg3[%c6_69] : memref<8xf32, #tpu.memory_space<smem>>
    %190 = vector.broadcast %189 : f32 to vector<1x128xf32>
    %191 = arith.addf %188, %190 : vector<1x128xf32>
    %cst_70 = arith.constant 0.000000e+00 : f32
    %192 = vector.broadcast %cst_70 : f32 to vector<1x128xf32>
    %193 = arith.maximumf %191, %192 : vector<1x128xf32>
    %c6_71 = arith.constant 6 : index
    %194 = memref.load %arg4[%c6_71] : memref<8xf32, #tpu.memory_space<smem>>
    %195 = vector.broadcast %194 : f32 to vector<1x128xf32>
    %196 = arith.mulf %193, %195 : vector<1x128xf32>
    %197 = arith.addf %169, %196 : vector<1x128xf32>
    %198 = vector.extract_strided_slice %0 {offsets = [0, 0], sizes = [1, 128], strides = [1, 1]} : vector<4x128xf32> to vector<1x128xf32>
    %c0_72 = arith.constant 0 : index
    %c7 = arith.constant 7 : index
    %199 = memref.load %arg2[%c0_72, %c7] : memref<4x8xf32, #tpu.memory_space<smem>>
    %200 = vector.broadcast %199 : f32 to vector<1x128xf32>
    %201 = arith.mulf %198, %200 : vector<1x128xf32>
    %202 = vector.extract_strided_slice %0 {offsets = [1, 0], sizes = [1, 128], strides = [1, 1]} : vector<4x128xf32> to vector<1x128xf32>
    %c1_73 = arith.constant 1 : index
    %c7_74 = arith.constant 7 : index
    %203 = memref.load %arg2[%c1_73, %c7_74] : memref<4x8xf32, #tpu.memory_space<smem>>
    %204 = vector.broadcast %203 : f32 to vector<1x128xf32>
    %205 = arith.mulf %202, %204 : vector<1x128xf32>
    %206 = arith.addf %201, %205 : vector<1x128xf32>
    %207 = vector.extract_strided_slice %0 {offsets = [2, 0], sizes = [1, 128], strides = [1, 1]} : vector<4x128xf32> to vector<1x128xf32>
    %c2_75 = arith.constant 2 : index
    %c7_76 = arith.constant 7 : index
    %208 = memref.load %arg2[%c2_75, %c7_76] : memref<4x8xf32, #tpu.memory_space<smem>>
    %209 = vector.broadcast %208 : f32 to vector<1x128xf32>
    %210 = arith.mulf %207, %209 : vector<1x128xf32>
    %211 = arith.addf %206, %210 : vector<1x128xf32>
    %212 = vector.extract_strided_slice %0 {offsets = [3, 0], sizes = [1, 128], strides = [1, 1]} : vector<4x128xf32> to vector<1x128xf32>
    %c3_77 = arith.constant 3 : index
    %c7_78 = arith.constant 7 : index
    %213 = memref.load %arg2[%c3_77, %c7_78] : memref<4x8xf32, #tpu.memory_space<smem>>
    %214 = vector.broadcast %213 : f32 to vector<1x128xf32>
    %215 = arith.mulf %212, %214 : vector<1x128xf32>
    %216 = arith.addf %211, %215 : vector<1x128xf32>
    %c7_79 = arith.constant 7 : index
    %217 = memref.load %arg3[%c7_79] : memref<8xf32, #tpu.memory_space<smem>>
    %218 = vector.broadcast %217 : f32 to vector<1x128xf32>
    %219 = arith.addf %216, %218 : vector<1x128xf32>
    %cst_80 = arith.constant 0.000000e+00 : f32
    %220 = vector.broadcast %cst_80 : f32 to vector<1x128xf32>
    %221 = arith.maximumf %219, %220 : vector<1x128xf32>
    %c7_81 = arith.constant 7 : index
    %222 = memref.load %arg4[%c7_81] : memref<8xf32, #tpu.memory_space<smem>>
    %223 = vector.broadcast %222 : f32 to vector<1x128xf32>
    %224 = arith.mulf %221, %223 : vector<1x128xf32>
    %225 = arith.addf %197, %224 : vector<1x128xf32>
    %c0_82 = arith.constant 0 : index
    %226 = memref.load %arg5[%c0_82] : memref<1xf32, #tpu.memory_space<smem>>
    %227 = vector.broadcast %226 : f32 to vector<1x128xf32>
    %228 = arith.addf %225, %227 : vector<1x128xf32>
    %229 = arith.negf %228 : vector<1x128xf32>
    %230 = math.exp %229 : vector<1x128xf32>
    %cst_83 = arith.constant 1.000000e+00 : f32
    %231 = vector.broadcast %cst_83 : f32 to vector<1x128xf32>
    %232 = arith.addf %231, %230 : vector<1x128xf32>
    %233 = arith.divf %231, %232 : vector<1x128xf32>
    %c0_84 = arith.constant 0 : index
    %c0_85 = arith.constant 0 : index
    %234 = vector.load %arg6[%c0_84, %c0_85] : memref<1x128xf32, #tpu.memory_space<vmem>>, vector<1x128xf32>
    tpu.vector_store %arg6[%c0_84, %c0_85], %233 {strides = array<i32>} : memref<1x128xf32, #tpu.memory_space<vmem>>, vector<1x128xf32>,
    return
  }
  func.func @transform_0(%arg0: i32) -> (i32, i32) {
    %c0_i32 = arith.constant 0 : i32
    %c0_i32_0 = arith.constant 0 : i32
    return %c0_i32, %arg0 : i32, i32
  }
  func.func @transform_1(%arg0: i32) -> (i32, i32) {
    %c0_i32 = arith.constant 0 : i32
    %c0_i32_0 = arith.constant 0 : i32
    %c0_i32_1 = arith.constant 0 : i32
    return %c0_i32, %c0_i32_0 : i32, i32
  }
  func.func @transform_2(%arg0: i32) -> i32 {
    %c0_i32 = arith.constant 0 : i32
    %c0_i32_0 = arith.constant 0 : i32
    return %c0_i32 : i32
  }
  func.func @transform_3(%arg0: i32) -> i32 {
    %c0_i32 = arith.constant 0 : i32
    %c0_i32_0 = arith.constant 0 : i32
    return %c0_i32 : i32
  }
  func.func @transform_4(%arg0: i32) -> i32 {
    %c0_i32 = arith.constant 0 : i32
    %c0_i32_0 = arith.constant 0 : i32
    return %c0_i32 : i32
  }
  func.func @transform_5(%arg0: i32) -> (i32, i32) {
    %c0_i32 = arith.constant 0 : i32
    %c0_i32_0 = arith.constant 0 : i32
    return %c0_i32, %arg0 : i32, i32
  }
}

</mosaic_0001>

<bundles_post_ra>
// kernel: tpu_custom_call.1
= control target key start
LH: loop header
LB: loop body
LE: loop exit
PB: predicated region body
PF: predicated region fallthrough
CT: control target
= control target key end

     0   :  { %11 = vsyncpa [#allocation4], 0  ;;  %s722_s0 = inlined_call_operand.hbm [shape: f32[4,128], index: 0, kind: input, shape index: {}]   ;;  %s723_s1 = inlined_call_operand.vmem [shape: f32[4,8], index: 1, kind: input, shape index: {}]   ;;  %s724_s2 = inlined_call_operand.vmem [shape: f32[8], index: 2, kind: input, shape index: {}]   ;;  %s725_s3 = inlined_call_operand.vmem [shape: f32[8], index: 3, kind: input, shape index: {}]   ;;  %s726_s4 = inlined_call_operand.<no memory space> [shape: f32[1], index: 4, kind: input, shape index: {}]   ;;  %s727_s5 = inlined_call_operand.hbm [shape: f32[1,128], index: 5, kind: output, shape index: {}]  }
   0x1   :  { %12 = vsyncpa [#allocation6], 0 }
   0x2   :  { %13 = vsyncpa [#allocation9], 0  ;;  %s41_s20 = sshll.u32 %s724_s2, 4  ;;  %s42_s20 = int_to_ptr.vmem [resolvable:$true] %s41_s20 }
   0x3   :  { %14 = vsyncpa [#allocation5], 0  ;;  %s409_s21 = scalar_lea.vmem %s42_s20, 16  ;;  %p414_p1 = scmp.lt.s32.totalorder %s42_s20, %s42_s20 }
   0x4   :  { %p410_p0 = scmp.ne.s32.totalorder %s42_s20, %s409_s21  ;;  %p415_p2 = scmp.lt.s32.totalorder %s409_s21, %s409_s21 }
   0x6   :  { %p416_p3 = por %p415_p2, %p414_p1 }
   0x8   :  { %p417_p4 = pnand %p416_p3, %p410_p0 }
   0xa   :  { %420 = shalt.err (!%p417_p4)
}
   0xb   :  { %s497_s22 = smov [#allocation8]   ;;  %s498_s23 = smov [#allocation3]  }
   0xc   :  { %44 = dma.vmem_to_smem %s42_s20, 16, %s497_s22, [#allocation9]  }
   0xd   :  { %s21_s24 = sshll.u32 %s498_s23, 4  ;;  %s31_s27 = sshll.u32 %s723_s1, 4  ;;  %s22_s24 = int_to_ptr.vmem [resolvable:$true] %s21_s24  ;;  %s32_s27 = int_to_ptr.vmem [resolvable:$true] %s31_s27 }
   0xe   :  { %s421_s29 = scalar_lea.hbm %s722_s0, 64 }
   0xf   :  { %p422_p5 = scmp.ne.s32.totalorder %s722_s0, %s421_s29  ;;  %p425_p6 = scmp.lt.u32.totalorder %s421_s29, %s722_s0 }
  0x11   :  { %p427_p7 = pnand %p425_p6, %p422_p5 }
  0x13   :  { %430 = shalt.err (!%p427_p7)
}
  0x14   :  { %s431_s9 = scalar_lea.vmem %s22_s24, 64  ;;  %p436_p9 = scmp.lt.s32.totalorder %s22_s24, %s22_s24 }
  0x15   :  { %p432_p8 = scmp.ne.s32.totalorder %s22_s24, %s431_s9  ;;  %p437_p10 = scmp.lt.s32.totalorder %s431_s9, %s431_s9 }
  0x17   :  { %p438_p11 = por %p437_p10, %p436_p9 }
  0x19   :  { %p439_p12 = pnand %p438_p11, %p432_p8 }
  0x1b   :  { %442 = shalt.err (!%p439_p12)
}
  0x1c   :  { %24 = dma.hbm_to_vmem [thread:$0]  %s722_s0, 64, %s22_s24, [#allocation4]  }
  0x1d   :  { %s51_s13 = sshll.u32 %s725_s3, 4  ;;  %s443_s14 = scalar_lea.vmem %s32_s27, 64  ;;  %s52_s13 = int_to_ptr.vmem [resolvable:$true] %s51_s13 }
  0x1e   :  { %p444_p13 = scmp.ne.s32.totalorder %s32_s27, %s443_s14  ;;  %p448_p0 = scmp.lt.s32.totalorder %s32_s27, %s32_s27 }
  0x1f   :  { %p449_p1 = scmp.lt.s32.totalorder %s443_s14, %s443_s14 }
  0x21   :  { %p450_p2 = por %p449_p1, %p448_p0 }
  0x23   :  { %p451_p3 = pnand %p450_p2, %p444_p13 }
  0x25   :  { %454 = shalt.err (!%p451_p3)
}
  0x26   :  { %s499_s15 = smov [#allocation7]   ;;  %s455_s16 = scalar_lea.vmem %s52_s13, 16 }
  0x27   :  { %34 = dma.vmem_to_smem %s32_s27, 64, %s499_s15, [#allocation6]  }
  0x28   :  { %p456_p4 = scmp.ne.s32.totalorder %s52_s13, %s455_s16  ;;  %p460_p5 = scmp.lt.s32.totalorder %s52_s13, %s52_s13 }
  0x29   :  { %p461_p6 = scmp.lt.s32.totalorder %s455_s16, %s455_s16 }
  0x2b   :  { %p462_p7 = por %p461_p6, %p460_p5 }
  0x2d   :  { %p463_p8 = pnand %p462_p7, %p456_p4 }
  0x2f   :  { %466 = shalt.err (!%p463_p8)
}
  0x30   :  { %s500_s0 = smov [#allocation10]  }
  0x31   :  { %54 = dma.vmem_to_smem %s52_s13, 16, %s500_s0, [#allocation9]  }
  0x32   :  { %489 = dma.done.wait [#allocation4], 64  }
  0x33   :  { %490 = vsyncadd [#allocation4], 4294967232 }
  0x34   :  { %491 = dma.done.wait [#allocation6], 64  }
  0x35   :  { %492 = vsyncadd [#allocation6], 4294967232 }
  0x36   :  { %493 = dma.done.wait [#allocation9], 32  }
  0x37   :  { %494 = vsyncadd [#allocation9], 4294967264 }
  0x38   :  { %69 = sfence }
  0x39   :  { %s71_s3 = sld [smem:[#allocation7]]  ;;  %s357_s21 = sld [smem:[#allocation7 + $0x1]]  ;;  %v555_v0 = vld [vmem:[#allocation3] sm:$0xf] }
  0x3a   :  { %s354_s17 = sld [smem:[#allocation7 + $0x80]]  ;;  %s358_s22 = sld [smem:[#allocation7 + $0x81]] }
  0x3b   :  { %s355_s18 = sld [smem:[#allocation7 + $0x100]]  ;;  %s557_s23 = sld [smem:[#allocation7 + $0x101]] }
  0x3c   :  { %s356_s19 = sld [smem:[#allocation7 + $0x180]]  ;;  %s559_s24 = sld [smem:[#allocation7 + $0x181]] }
  0x3d   :  { %s553_s20 = sld [smem:[#allocation8]]  ;;  %s561_s25 = sld [smem:[#allocation7 + $0x2]] }
  0x3e   :  { %s563_s26 = sld [smem:[#allocation7 + $0x82]]  ;;  %s573_s28 = sld [smem:[#allocation10]] }
  0x3f   :  { %v72_v1 = vstv %s71_s3  ;;  %s567_s27 = sld [smem:[#allocation7 + $0x102]]  ;;  %s575_s29 = sld [smem:[#allocation8 + $0x1]]  ;;  %v104_v10 = vstv %s357_s21 }
  0x40   :  { %v75_v2 = vstv %s354_s17  ;;  %v73_v3 = vmul.f32 %v72_v1, %v555_v0  ;;  %s569_s2 = sld [smem:[#allocation7 + $0x182]]  ;;  %v107_v11 = vstv %s358_s22  ;;  %s577_s30 = sld [smem:[#allocation7 + $0x3]]  ;;  %v105_v13 = vmul.f32 %v104_v10, %v555_v0 }
  0x41   :  { %v76_v4 = vmul.f32 %v75_v2, %v555_v0  ;;  %v82_v5 = vstv %s355_s18  ;;  %v108_v14 = vmul.f32 %v107_v11, %v555_v0  ;;  %s581_s6 = sld [smem:[#allocation7 + $0x83]]  ;;  %v114_v17 = vstv %s557_s23  ;;  %s590_s8 = sld [smem:[#allocation10 + $0x1]] }
  0x42   :  { %v89_v6 = vstv %s356_s19  ;;  %v83_v7 = vmul.f32 %v82_v5, %v555_v0  ;;  %v121_v18 = vstv %s559_s24  ;;  %s585_s7 = sld [smem:[#allocation7 + $0x103]]  ;;  %v115_v21 = vmul.f32 %v114_v17, %v555_v0  ;;  %s597_s1 = sld [smem:[#allocation8 + $0x2]] }
  0x43   :  { %v90_v8 = vmul.f32 %v89_v6, %v555_v0  ;;  %v78_v9 = vrot.slane %v76_v4, 1  ;;  %v96_v19 = vstv %s553_s20  ;;  %v110_v20 = vrot.slane %v108_v14, 1  ;;  %s592_s9 = sld [smem:[#allocation7 + $0x183]]  ;;  %s600_s10 = sld [smem:[#allocation7 + $0x4]] }
  0x44   :  { %v85_v12 = vrot.slane %v83_v7, 2  ;;  %v122_v22 = vmul.f32 %v121_v18, %v555_v0  ;;  %v136_v24 = vstv %s561_s25  ;;  %v139_v25 = vstv %s563_s26  ;;  %s605_s11 = sld [smem:[#allocation7 + $0x84]]  ;;  %s614_s14 = sld [smem:[#allocation10 + $0x2]] }
  0x45   :  { %v80_v15 = vadd.f32 %v78_v9, %v73_v3  ;;  %v92_v16 = vrot.slane %v90_v8, 3  ;;  %v146_v26 = vstv %s567_s27  ;;  %v112_v27 = vadd.f32 %v110_v20, %v105_v13  ;;  %s610_s12 = sld [smem:[#allocation7 + $0x104]]  ;;  %s619_s15 = sld [smem:[#allocation8 + $0x3]] }
  0x46   :  { %v117_v28 = vrot.slane %v115_v21, 2  ;;  %v124_v29 = vrot.slane %v122_v22, 3  ;;  %v137_v30 = vmul.f32 %v136_v24, %v555_v0  ;;  %v140_v32 = vmul.f32 %v139_v25, %v555_v0  ;;  %s612_s13 = sld [smem:[#allocation7 + $0x184]]  ;;  %s621_s16 = sld [smem:[#allocation10 + $0x3]] }
  0x47   :  { %v87_v23 = vadd.f32 %v85_v12, %v80_v15  ;;  %v147_v33 = vmul.f32 %v146_v26, %v555_v0  ;;  %v153_v34 = vstv %s569_s2  ;;  %v100_v35 = vstv %s573_s28  ;;  %s625_s0 = sld [smem:[#allocation7 + $0x5]]  ;;  %s640_s19 = sld [smem:[#allocation8 + $0x4]] }
  0x48   :  { %v119_v36 = vadd.f32 %v117_v28, %v112_v27  ;;  %v128_v37 = vstv %s575_s29  ;;  %v154_v38 = vmul.f32 %v153_v34, %v555_v0  ;;  %v142_v40 = vrot.slane %v140_v32, 1  ;;  %s630_s3 = sld [smem:[#allocation7 + $0x85]]  ;;  %s645_s20 = sld [smem:[#allocation7 + $0x6]] }
  0x49   :  { %v94_v31 = vadd.f32 %v92_v16, %v87_v23  ;;  %v149_v41 = vrot.slane %v147_v33, 2  ;;  %v168_v42 = vstv %s577_s30  ;;  %v171_v46 = vstv %s581_s6  ;;  %s632_s17 = sld [smem:[#allocation7 + $0x105]]  ;;  %s649_s21 = sld [smem:[#allocation10 + $0x4]] }
  0x4a   :  { %v126_v43 = vadd.f32 %v124_v29, %v119_v36  ;;  %v156_v44 = vrot.slane %v154_v38, 3  ;;  %v169_v45 = vmul.f32 %v168_v42, %v555_v0  ;;  %v144_v48 = vadd.f32 %v142_v40, %v137_v30  ;;  %s637_s18 = sld [smem:[#allocation7 + $0x185]]  ;;  %s651_s22 = sld [smem:[#allocation7 + $0x86]] }
  0x4b   :  { %v97_v39 = vadd.f32 %v96_v19, %v94_v31  ;;  %v172_v49 = vmul.f32 %v171_v46, %v555_v0  ;;  %v178_v50 = vstv %s585_s7  ;;  %v132_v52 = vstv %s590_s8  ;;  %s657_s23 = sld [smem:[#allocation7 + $0x106]]  ;;  %s664_s25 = sld [smem:[#allocation8 + $0x5]] }
  0x4c   :  { %v129_v51 = vadd.f32 %v128_v37, %v126_v43  ;;  %v179_v53 = vmul.f32 %v178_v50, %v555_v0  ;;  %v185_v54 = vstv %s592_s9  ;;  %v151_v55 = vadd.f32 %v149_v41, %v144_v48  ;;  %s659_s24 = sld [smem:[#allocation7 + $0x186]]  ;;  %s666_s26 = sld [smem:[#allocation7 + $0x7]] }
  0x4d   :  { %v98_v47 = vmax.f32 %v97_v39, 0.0  ;;  %v160_v56 = vstv %s597_s1  ;;  %v174_v57 = vrot.slane %v172_v49, 1  ;;  %v186_v58 = vmul.f32 %v185_v54, %v555_v0  ;;  %s672_s27 = sld [smem:[#allocation7 + $0x87]]  ;;  %s682_s29 = sld [smem:[#allocation10 + $0x5]] }
  0x4e   :  { %v130_v60 = vmax.f32 %v129_v51, 0.0  ;;  %v181_v61 = vrot.slane %v179_v53, 2  ;;  %v200_v62 = vstv %s600_s10  ;;  %v158_v63 = vadd.f32 %v156_v44, %v151_v55  ;;  %s676_s2 = sld [smem:[#allocation7 + $0x107]]  ;;  %s687_s30 = sld [smem:[#allocation8 + $0x6]] }
  0x4f   :  { %v101_v59 = vmul.f32 %v100_v35, %v98_v47  ;;  %v176_v1 = vadd.f32 %v174_v57, %v169_v45  ;;  %v188_v2 = vrot.slane %v186_v58, 3  ;;  %v201_v3 = vmul.f32 %v200_v62, %v555_v0  ;;  %s679_s28 = sld [smem:[#allocation7 + $0x187]]  ;;  %s695_s6 = sld [smem:[#allocation10 + $0x6]] }
  0x50   :  { %v133_v4 = vmul.f32 %v132_v52, %v130_v60  ;;  %v203_v5 = vstv %s605_s11  ;;  %v210_v6 = vstv %s610_s12  ;;  %v217_v7 = vstv %s612_s13  ;;  %s397_s7 = sld [smem:[#allocation8 + $0x7]]  ;;  %s501_s10 = smov [#allocation11]  }
  0x51   :  { %v161_v8 = vadd.f32 %v160_v56, %v158_v63  ;;  %v183_v9 = vadd.f32 %v181_v61, %v176_v1  ;;  %v204_v10 = vmul.f32 %v203_v5, %v555_v0  ;;  %v211_v11 = vmul.f32 %v210_v6, %v555_v0  ;;  %s398_s8 = sld [smem:[#allocation10 + $0x7]]  ;;  %s343_s11 = sshll.u32 %s501_s10, 4  ;;  %s344_s11 = int_to_ptr.vmem [resolvable:$true] %s343_s11 }
  0x52   :  { %v164_v12 = vstv %s614_s14  ;;  %v192_v13 = vstv %s619_s15  ;;  %v196_v14 = vstv %s621_s16  ;;  %v218_v15 = vmul.f32 %v217_v7, %v555_v0  ;;  %s467_s12 = scalar_lea.vmem %s344_s11, 16  ;;  %s471_s13 = scalar_lea.vmem %s344_s11, 32 }
  0x53   :  { %v162_v16 = vmax.f32 %v161_v8, 0.0  ;;  %v190_v17 = vadd.f32 %v188_v2, %v183_v9  ;;  %v206_v18 = vrot.slane %v204_v10, 1  ;;  %v213_v19 = vrot.slane %v211_v11, 2  ;;  %p468_p9 = scmp.ne.s32.totalorder %s344_s11, %s467_s12  ;;  %p472_p10 = scmp.lt.s32.totalorder %s344_s11, %s344_s11 }
  0x54   :  { %v134_v20 = vadd.f32 %v133_v4, %v101_v59  ;;  %v232_v21 = vstv %s625_s0  ;;  %v235_v22 = vstv %s630_s3  ;;  %v242_v23 = vstv %s632_s17  ;;  %p473_p11 = scmp.lt.s32.totalorder %s471_s13, %s467_s12 }
  0x55   :  { %v165_v24 = vmul.f32 %v164_v12, %v162_v16  ;;  %v193_v25 = vadd.f32 %v192_v13, %v190_v17  ;;  %v208_v26 = vadd.f32 %v206_v18, %v201_v3  ;;  %v220_v27 = vrot.slane %v218_v15, 3 }
  0x56   :  { %v233_v28 = vmul.f32 %v232_v21, %v555_v0  ;;  %v236_v29 = vmul.f32 %v235_v22, %v555_v0  ;;  %v243_v30 = vmul.f32 %v242_v23, %v555_v0  ;;  %v249_v31 = vstv %s637_s18  ;;  %p474_p12 = por %p473_p11, %p472_p10 }
  0x57   :  { %v194_v32 = vmax.f32 %v193_v25, 0.0  ;;  %v215_v33 = vadd.f32 %v213_v19, %v208_v26  ;;  %v224_v34 = vstv %s640_s19  ;;  %v250_v35 = vmul.f32 %v249_v31, %v555_v0 }
  0x58   :  { %v166_v36 = vadd.f32 %v165_v24, %v134_v20  ;;  %v238_v37 = vrot.slane %v236_v29, 1  ;;  %v245_v38 = vrot.slane %v243_v30, 2  ;;  %v264_v39 = vstv %s645_s20  ;;  %p475_p13 = pnand %p474_p12, %p468_p9 }
  0x59   :  { %v197_v40 = vmul.f32 %v196_v14, %v194_v32  ;;  %v222_v41 = vadd.f32 %v220_v27, %v215_v33  ;;  %v228_v42 = vstv %s649_s21  ;;  %v252_v43 = vrot.slane %v250_v35, 3 }
  0x5a   :  { %v240_v44 = vadd.f32 %v238_v37, %v233_v28  ;;  %v267_v45 = vstv %s651_s22  ;;  %v274_v46 = vstv %s657_s23  ;;  %v281_v47 = vstv %s659_s24 }
  0x5b   :  { %v225_v48 = vadd.f32 %v224_v34, %v222_v41  ;;  %v265_v49 = vmul.f32 %v264_v39, %v555_v0  ;;  %v268_v50 = vmul.f32 %v267_v45, %v555_v0  ;;  %v275_v51 = vmul.f32 %v274_v46, %v555_v0 }
  0x5c   :  { %v198_v52 = vadd.f32 %v197_v40, %v166_v36  ;;  %v247_v53 = vadd.f32 %v245_v38, %v240_v44  ;;  %v256_v54 = vstv %s664_s25  ;;  %v282_v55 = vmul.f32 %v281_v47, %v555_v0 }
  0x5d   :  { %v226_v56 = vmax.f32 %v225_v48, 0.0  ;;  %v270_v57 = vrot.slane %v268_v50, 1  ;;  %v277_v58 = vrot.slane %v275_v51, 2  ;;  %v296_v59 = vstv %s666_s26 }
  0x5e   :  { %v254_v60 = vadd.f32 %v252_v43, %v247_v53  ;;  %v284_v61 = vrot.slane %v282_v55, 3  ;;  %v297_v62 = vmul.f32 %v296_v59, %v555_v0  ;;  %v299_v63 = vstv %s672_s27 }
  0x5f   :  { %v229_v1 = vmul.f32 %v228_v42, %v226_v56  ;;  %v272_v2 = vadd.f32 %v270_v57, %v265_v49  ;;  %v300_v3 = vmul.f32 %v299_v63, %v555_v0  ;;  %v306_v4 = vstv %s676_s2 }
  0x60   :  { %v257_v5 = vadd.f32 %v256_v54, %v254_v60  ;;  %v307_v6 = vmul.f32 %v306_v4, %v555_v0  ;;  %v313_v7 = vstv %s679_s28  ;;  %v260_v8 = vstv %s682_s29 }
  0x61   :  { %v279_v9 = vadd.f32 %v277_v58, %v272_v2  ;;  %v302_v10 = vrot.slane %v300_v3, 1  ;;  %v314_v11 = vmul.f32 %v313_v7, %v555_v0  ;;  %v288_v13 = vstv %s687_s30 }
  0x62   :  { %v258_v12 = vmax.f32 %v257_v5, 0.0  ;;  %v309_v14 = vrot.slane %v307_v6, 2  ;;  %v230_v15 = vadd.f32 %v229_v1, %v198_v52  ;;  %v292_v22 = vstv %s695_s6 }
  0x63   :  { %v286_v16 = vadd.f32 %v284_v61, %v279_v9  ;;  %v304_v17 = vadd.f32 %v302_v10, %v297_v62  ;;  %v316_v18 = vrot.slane %v314_v11, 3  ;;  %v320_v23 = vstv %s397_s7 }
  0x64   :  { %v261_v19 = vmul.f32 %v260_v8, %v258_v12  ;;  %v324_v29 = vstv %s398_s8  ;;  %v328_v32 = vstv %s726_s4 }
  0x65   :  { %v289_v20 = vadd.f32 %v288_v13, %v286_v16  ;;  %v311_v21 = vadd.f32 %v309_v14, %v304_v17 }
  0x66   :  { %v262_v24 = vadd.f32 %v261_v19, %v230_v15 }
  0x67   :  { %v290_v25 = vmax.f32 %v289_v20, 0.0  ;;  %v318_v26 = vadd.f32 %v316_v18, %v311_v21 }
  0x69   :  { %v293_v27 = vmul.f32 %v292_v22, %v290_v25  ;;  %v321_v28 = vadd.f32 %v320_v23, %v318_v26 }
  0x6b   :  { %v294_v0 = vadd.f32 %v293_v27, %v262_v24  ;;  %v322_v30 = vmax.f32 %v321_v28, 0.0 }
  0x6d   :  { %v325_v31 = vmul.f32 %v324_v29, %v322_v30 }
  0x6f   :  { %v326_v33 = vadd.f32 %v325_v31, %v294_v0 }
  0x71   :  { %v329_v34 = vadd.f32 %v328_v32, %v326_v33 }
  0x73   :  { %v399_v35 = vmul.f32 -1.442695, %v329_v34 }
  0x75   :  { %405 = vpow2.f32 %v399_v35 }
  0x7f   :  { %v406_v36 = vpop.eup %405 }
  0x80   :  { %v333_v37 = vadd.f32 1.0, %v406_v36 }
  0x82   :  { %407 = vrcp.f32 %v333_v37 }
  0x8c   :  { %v408_v38 = vpop.eup %407 }
  0x8d   :  { %336 = vst [vmem:[#allocation11] sm:$0x1] %v408_v38 }
  0x8e   :  { %478 = shalt.err (!%p475_p13)
}
  0x8f   :  { %s479_s15 = scalar_lea.hbm %s727_s5, 16 }
  0x90   :  { %p480_p0 = scmp.ne.s32.totalorder %s727_s5, %s479_s15  ;;  %p483_p1 = scmp.lt.u32.totalorder %s479_s15, %s727_s5 }
  0x92   :  { %p485_p2 = pnand %p483_p1, %p480_p0 }
  0x94   :  { %488 = shalt.err (!%p485_p2)
}
  0x95   :  { %346 = dma.vmem_to_hbm [thread:$0]  %s344_s11, 16, %s727_s5, [#allocation5]  }
  0x96   :  { %495 = dma.done.wait [#allocation5], 16  }
  0x97   :  { %496 = vsyncadd [#allocation5], 4294967280 }
  0x98   :  { %350 = vsyncpa [#allocation4], 1 }
  0x99   :  { %351 = vsyncpa [#allocation5], 1 }
  0x9a   :  { %352 = vsyncpa [#allocation6], 1 }
  0x9b   :  { %353 = vsyncpa [#allocation9], 1 }

</bundles_post_ra>
